<compile_context>
chip_gen: v5e
topology: v5e:2x2
jax: 0.10.0
libtpu: 0.0.40
codegen_flags: <defaults>
</compile_context>

<pallas_src>
import jax
import jax.numpy as jnp
from jax.experimental import pallas as pl
from jax.experimental.pallas import tpu as pltpu


def _intensity_kernel(noise_ref, x_ref, o_ref):
    # noise_ref: (TM, 1) float32 VMEM column for the current row-block.
    # x_ref / o_ref: (TM, TN) lane-dense tile of the flattened input/output.
    x = x_ref[...]
    noise = noise_ref[...]  # (TM, 1), broadcasts along the lane dim
    o_ref[...] = (x.astype(jnp.float32) * noise).astype(o_ref.dtype)


def _pick_row_tile(b, target=256):
    # Sublane (second-to-last) block dim: multiple of 8, or the full dim.
    if b <= 8:
        return b
    return min(target, (b // 8) * 8)


def _pick_lane_tile(n, target=2048):
    # Lane (last) block dim: multiple of 128, or the full dim.
    if n <= target:
        return n
    return target  # 2048 is a multiple of 128; partial last block is masked


def intensity(x, key, scale):
    """x: (B, C, H, W). Returns x * (1 + scale * clamp(randn(B,1,1,1), -2, 2))."""
    B, C, H, W = x.shape
    N = C * H * W

    # Hoisted per-sample noise: one clamp + affine for the whole batch.
    r = jax.random.normal(key, (B,), dtype=jnp.float32)
    noise = (1.0 + jnp.float32(scale) * jnp.clip(r, -2.0, 2.0)).reshape(B, 1)

    # Lane-dense flattened view (free for contiguous NCHW).
    x2d = x.reshape(B, N)

    tm = _pick_row_tile(B)
    tn = _pick_lane_tile(N)
    grid = (pl.cdiv(B, tm), pl.cdiv(N, tn))

    out2d = pl.pallas_call(
        _intensity_kernel,
        out_shape=jax.ShapeDtypeStruct((B, N), x.dtype),
        grid_spec=pl.GridSpec(
            grid=grid,
            in_specs=[
                pl.BlockSpec((tm, 1), lambda i, j: (i, 0)),   # noise column
                pl.BlockSpec((tm, tn), lambda i, j: (i, j)),  # x tile
            ],
            out_specs=pl.BlockSpec((tm, tn), lambda i, j: (i, j)),
        ),
        compiler_params=pltpu.CompilerParams(
            dimension_semantics=("parallel", "parallel"),
            vmem_limit_bytes=32 * 1024 * 1024,
        ),
    )(noise, x2d)

    return out2d.reshape(B, C, H, W)


if __name__ == "__main__":
    key = jax.random.PRNGKey(0)
    kx, kr = jax.random.split(key)

    B, C, H, W = 2, 4, 16, 16
    x = jax.random.normal(kx, (B, C, H, W), dtype=jnp.float32)
    scale = 0.1

    out = jax.block_until_ready(intensity(x, kr, scale))

    # Reference check in plain JAX (same math, same rng draw).
    r = jax.random.normal(kr, (B,), dtype=jnp.float32)
    noise = 1.0 + scale * jnp.clip(r, -2.0, 2.0)
    ref = x * noise[:, None, None, None]
    assert out.shape == (B, C, H, W)
    assert jnp.allclose(out, ref, atol=1e-6, rtol=1e-6)

    print("KERNEL_OK")
</pallas_src>

<mosaic_0001>
module attributes {stable_mosaic.version = 11 : i64} {
  func.func @_intensity_kernel(%arg0: i32, %arg1: i32, %arg2: memref<2x1xf32, #tpu.memory_space<vmem>>, %arg3: memref<2x1024xf32, #tpu.memory_space<vmem>>, %arg4: memref<2x1024xf32, #tpu.memory_space<vmem>>) attributes {dimension_semantics = [#tpu.dimension_semantics<parallel>, #tpu.dimension_semantics<parallel>], iteration_bounds = array<i64: 1, 1>, scalar_prefetch = 0 : i64, scratch_operands = 0 : i64, tpu.core_type = #tpu.core_type<tc>, window_params = [{transform_indices = @transform_0, window_bounds = array<i64: 2, 1>}, {transform_indices = @transform_1, window_bounds = array<i64: 2, 1024>}, {transform_indices = @transform_2, window_bounds = array<i64: 2, 1024>}]} {
    %c0 = arith.constant 0 : index
    %c0_0 = arith.constant 0 : index
    %0 = vector.load %arg3[%c0, %c0_0] : memref<2x1024xf32, #tpu.memory_space<vmem>>, vector<2x1024xf32>
    %c0_1 = arith.constant 0 : index
    %c0_2 = arith.constant 0 : index
    %1 = vector.load %arg2[%c0_1, %c0_2] : memref<2x1xf32, #tpu.memory_space<vmem>>, vector<2x1xf32>
    %2 = vector.broadcast %1 : vector<2x1xf32> to vector<2x1024xf32>
    %3 = arith.mulf %0, %2 : vector<2x1024xf32>
    %c0_3 = arith.constant 0 : index
    %c0_4 = arith.constant 0 : index
    %4 = vector.load %arg4[%c0_3, %c0_4] : memref<2x1024xf32, #tpu.memory_space<vmem>>, vector<2x1024xf32>
    tpu.vector_store %arg4[%c0_3, %c0_4], %3 {strides = array<i32>} : memref<2x1024xf32, #tpu.memory_space<vmem>>, vector<2x1024xf32>,
    return
  }
  func.func @transform_0(%arg0: i32, %arg1: i32) -> (i32, i32) {
    %c0_i32 = arith.constant 0 : i32
    %c0_i32_0 = arith.constant 0 : i32
    return %arg0, %c0_i32 : i32, i32
  }
  func.func @transform_1(%arg0: i32, %arg1: i32) -> (i32, i32) {
    %c0_i32 = arith.constant 0 : i32
    return %arg0, %arg1 : i32, i32
  }
  func.func @transform_2(%arg0: i32, %arg1: i32) -> (i32, i32) {
    %c0_i32 = arith.constant 0 : i32
    return %arg0, %arg1 : i32, i32
  }
}

</mosaic_0001>

<bundles_post_ra>
// kernel: tpu_custom_call.1
= control target key start
LH: loop header
LB: loop body
LE: loop exit
PB: predicated region body
PF: predicated region fallthrough
CT: control target
= control target key end

     0   :  { %7 = vsyncpa [#allocation3], 0  ;;  %s144_s0 = inlined_call_operand.vmem [shape: f32[2,1], index: 0, kind: input, shape index: {}]   ;;  %s145_s1 = inlined_call_operand.hbm [shape: f32[2,1024], index: 1, kind: input, shape index: {}]   ;;  %s146_s2 = inlined_call_operand.hbm [shape: f32[2,1024], index: 2, kind: output, shape index: {}]  }
   0x1   :  { %8 = vsyncpa [#allocation4], 0  ;;  %s16_s11 = sshll.u32 %s145_s1, 4  ;;  %s116_s12 = smov [#allocation2]   ;;  %s17_s11 = int_to_ptr.hbm [resolvable:$true] %s16_s11 }
   0x2   :  { %s18_s13 = sshll.u32 %s116_s12, 4  ;;  %s19_s13 = int_to_ptr.vmem [resolvable:$true] %s18_s13 }
   0x3   :  { %21 = dma.hbm_to_vmem [thread:$0]  %s17_s11, 256, %s19_s13, [#allocation3]  }
   0x4   :  { %112 = dma.done.wait [#allocation3], 256  }
   0x5   :  { %113 = vsyncadd [#allocation3], 4294967040  ;;  %v117_v0 = vmov 0   ;;  %v28_v1 = vld [vmem:[%s144_s0] sm:$0x3]  ;;  %v27_v7 = vld [vmem:[#allocation2 + $0x8] sm:$0xff] }
   0x6   :  { %63 = vset.pattern.permute.xlu0 %v117_v0  ;;  %v118_v2 = vmov 269488144   ;;  %v26_v6 = vld [vmem:[#allocation2] sm:$0xff]  ;;  %s119_s1 = smov [#allocation5]   ;;  %s49_s19 = sshll.u32 %s146_s2, 4  ;;  %s50_s19 = int_to_ptr.hbm [resolvable:$true] %s49_s19 }
   0x7   :  { %31 = vperm.xlu0 %63, %v28_v1   ;;  %v34_v3 = vunpack.c.l.s4 %v118_v2  ;;  %s47_s16 = sshll.u32 %s119_s1, 4  ;;  %s48_s16 = int_to_ptr.vmem [resolvable:$true] %s47_s16 }
   0x9   :  { %v35_v4 = vunpack.c.0.s8 %v34_v3 }
  0x79   :  { %v32_v5 = vpop.permute.xlu0 %31 }
  0x7a   :  { %v36_v8 = vperm.slane %v32_v5, %v35_v4 }
  0x7c   :  { %v38_v9 = vmul.f32 %v36_v8, %v26_v6  ;;  %v39_v10 = vmul.f32 %v36_v8, %v27_v7 }
  0x7e   :  { %40 = vst [vmem:[#allocation5] sm:$0xff] %v38_v9 }
  0x7f   :  { %41 = vst [vmem:[#allocation5 + $0x8] sm:$0xff] %v39_v10 }
  0x80   :  { %52 = dma.vmem_to_hbm [thread:$0]  %s48_s16, 256, %s50_s19, [#allocation4]  }
  0x81   :  { %114 = dma.done.wait [#allocation4], 256  }
  0x82   :  { %115 = vsyncadd [#allocation4], 4294967040 }
  0x83   :  { %57 = vsyncpa [#allocation3], 1 }
  0x84   :  { %58 = vsyncpa [#allocation4], 1 }

</bundles_post_ra>
